<compile_context>
chip_gen: v5e
topology: v5e:2x2
jax: 0.10.0
libtpu: 0.0.40
codegen_flags: <defaults>
</compile_context>

<pallas_src>
import functools
import math

import jax
import jax.numpy as jnp
from jax import lax
from jax.experimental import pallas as pl
from jax.experimental.pallas import tpu as pltpu

LANE = 128
_INV_SQRT2 = 1.0 / math.sqrt(2.0)
_SQRT_2_OVER_PI = math.sqrt(2.0 / math.pi)


def _round_up(a, b):
    return -(-a // b) * b


def _gelu(x, approximate=False):
    if approximate:
        # tanh-approx GELU: transcendental goes to the EUP (separate bundle slot).
        return 0.5 * x * (1.0 + jnp.tanh(_SQRT_2_OVER_PI * (x + 0.044715 * x * x * x)))
    # PyTorch nn.GELU() default: exact erf formulation.
    return 0.5 * x * (1.0 + lax.erf(x * _INV_SQRT2))


# --------------------------------------------------------------------------
# Kernels: one (row-tile i, hidden-tile j) step of y = GELU(x@W1+b1) @ W2 + b2.
# j is the reduction axis of the second matmul (last grid axis, 'arbitrary').
# --------------------------------------------------------------------------
def _mlp_kernel_f32_out(x_ref, w1_ref, b1_ref, w2_ref, b2_ref, o_ref, *, approximate):
    """f32 output: accumulate directly into the j-resident output block."""
    j = pl.program_id(1)

    @pl.when(j == 0)
    def _init():
        o_ref[...] = jnp.broadcast_to(b2_ref[...].astype(o_ref.dtype), o_ref.shape)

    h = jnp.dot(x_ref[...], w1_ref[...], preferred_element_type=jnp.float32)
    h = _gelu(h + b1_ref[...].astype(jnp.float32), approximate)
    o_ref[...] += jnp.dot(h.astype(w2_ref.dtype), w2_ref[...],
                          preferred_element_type=jnp.float32)


def _mlp_kernel_acc(x_ref, w1_ref, b1_ref, w2_ref, b2_ref, o_ref, acc_ref, *, approximate):
    """Non-f32 output: f32 VMEM accumulator, cast + store on the last j."""
    j = pl.program_id(1)

    @pl.when(j == 0)
    def _init():
        acc_ref[...] = jnp.zeros_like(acc_ref)

    h = jnp.dot(x_ref[...], w1_ref[...], preferred_element_type=jnp.float32)
    h = _gelu(h + b1_ref[...].astype(jnp.float32), approximate)
    acc_ref[...] += jnp.dot(h.astype(w2_ref.dtype), w2_ref[...],
                            preferred_element_type=jnp.float32)

    @pl.when(j == pl.num_programs(1) - 1)
    def _finalize():
        o_ref[...] = (acc_ref[...] + b2_ref[...].astype(jnp.float32)).astype(o_ref.dtype)


# --------------------------------------------------------------------------
# Wrapper
# --------------------------------------------------------------------------
def prepare_mlp_weights(w1, b1, w2, b2):
    """Pad weights/biases to lane multiples ONCE, outside the per-call hot path.

    w1: (C_in, H), b1: (H,), w2: (H, C_out), b2: (C_out,)  [transposed vs nn.Linear]
    """
    C_in, H = w1.shape
    Hw, C_out = w2.shape
    assert Hw == H and b1.shape == (H,) and b2.shape == (C_out,)
    Cin_p, H_p, Cout_p = (_round_up(d, LANE) for d in (C_in, H, C_out))
    w1_p = jnp.pad(w1, ((0, Cin_p - C_in), (0, H_p - H)))
    b1_p = jnp.pad(b1.reshape(1, H), ((0, 0), (0, H_p - H)))
    w2_p = jnp.pad(w2, ((0, H_p - H), (0, Cout_p - C_out)))
    b2_p = jnp.pad(b2.reshape(1, C_out), ((0, 0), (0, Cout_p - C_out)))
    return {"w1": w1_p, "b1": b1_p, "w2": w2_p, "b2": b2_p, "dims": (C_in, H, C_out)}


def _vmem_capacity_bytes():
    try:
        return int(pltpu.get_tpu_info().vmem_capacity_bytes)
    except Exception:
        return 64 * 1024 * 1024  # conservative fallback (v7x per-TC)


def _choose_th(H_p, th_max):
    """Largest multiple of 128 that divides H_p and is <= th_max."""
    th = max(LANE, min(th_max, H_p))
    th = (th // LANE) * LANE
    while H_p % th != 0:
        th -= LANE
    return th


def mlp_pallas(x, params, *, tm=None, th=512, approximate_gelu=False):
    """x: (M, C_in). params: output of prepare_mlp_weights. Returns (M, C_out)."""
    w1_p, b1_p, w2_p, b2_p = params["w1"], params["b1"], params["w2"], params["b2"]
    C_in, H, C_out = params["dims"]
    M = x.shape[0]
    assert x.shape[1] == C_in
    Cin_p, H_p = w1_p.shape
    Cout_p = w2_p.shape[1]

    out_dtype = x.dtype
    x_isize = jnp.dtype(x.dtype).itemsize
    w_isize = jnp.dtype(w1_p.dtype).itemsize
    o_isize = jnp.dtype(out_dtype).itemsize
    acc_in_out = (out_dtype == jnp.float32)

    th = _choose_th(H_p, th)

    # Generation-aware VMEM budget: ~3/4 of physical, capped at 100 MiB
    # (=> ~48 MiB on v7x's 64 MiB per-TC VMEM, ~96 MiB on v5e/v6e's 128 MiB).
    vmem_cap = min(_vmem_capacity_bytes() * 3 // 4, 100 * 1024 * 1024)

    # Row-tile rounding: bf16 packs 2 rows/sublane, int8/fp8 pack 4.
    row_mult = {1: 32, 2: 16}.get(x_isize, 8)

    # Working set: double-buffered W1/W2/bias slices (fixed per tm) plus
    # per-row cost of the x tile, output tile, and (optional) f32 accumulator.
    fixed = 2 * w_isize * (Cin_p * th + th + th * Cout_p + Cout_p)
    per_row = (2 * x_isize * Cin_p + 2 * o_isize * Cout_p
               + (0 if acc_in_out else 4 * Cout_p))
    tm_budget = max(row_mult, (vmem_cap - fixed) // per_row)

    tm = 1024 if tm is None else tm
    tm = min(tm, tm_budget)
    tm = min(tm, _round_up(M, row_mult))          # don't over-pad tiny inputs
    # Keep the 'parallel' row axis at >= 2 tiles when M allows (v7x: 2 TCs).
    if M >= 2 * row_mult and tm >= _round_up(M, row_mult):
        tm = _round_up(-(-M // 2), row_mult)
    tm = max(row_mult, (tm // row_mult) * row_mult)

    M_p = _round_up(M, tm)
    if M_p == M and Cin_p == C_in:
        x_p = x
    else:
        x_p = jnp.pad(x, ((0, M_p - M), (0, Cin_p - C_in)))

    grid = (M_p // tm, H_p // th)

    est = (fixed
           + 2 * x_isize * tm * Cin_p
           + 2 * o_isize * tm * Cout_p
           + (0 if acc_in_out else 4 * tm * Cout_p))
    vmem_limit = int(min(vmem_cap, max(est * 5 // 4, 16 * 1024 * 1024)))

    if acc_in_out:
        kernel = functools.partial(_mlp_kernel_f32_out, approximate=approximate_gelu)
        scratch = []
    else:
        kernel = functools.partial(_mlp_kernel_acc, approximate=approximate_gelu)
        scratch = [pltpu.VMEM((tm, Cout_p), jnp.float32)]

    out = pl.pallas_call(
        kernel,
        out_shape=jax.ShapeDtypeStruct((M_p, Cout_p), out_dtype),
        grid_spec=pltpu.PrefetchScalarGridSpec(
            num_scalar_prefetch=0,
            grid=grid,
            in_specs=[
                pl.BlockSpec((tm, Cin_p), lambda i, j: (i, 0)),    # x row tile (j-resident)
                pl.BlockSpec((Cin_p, th), lambda i, j: (0, j)),    # W1 hidden slice
                pl.BlockSpec((1, th), lambda i, j: (0, j)),        # b1 hidden slice
                pl.BlockSpec((th, Cout_p), lambda i, j: (j, 0)),   # W2 hidden slice
                pl.BlockSpec((1, Cout_p), lambda i, j: (0, 0)),    # b2 (full)
            ],
            out_specs=pl.BlockSpec((tm, Cout_p), lambda i, j: (i, 0)),
            scratch_shapes=scratch,
        ),
        compiler_params=pltpu.CompilerParams(
            dimension_semantics=("parallel", "arbitrary"),
            vmem_limit_bytes=vmem_limit,
        ),
    )(x_p, w1_p, b1_p, w2_p, b2_p)

    # Dropout with p=0.0 is the identity -> omitted.
    return out[:M, :C_out]


def mlp_reference(x, w1, b1, w2, b2):
    h = _gelu(x @ w1 + b1.reshape(1, -1))
    return h @ w2 + b2.reshape(1, -1)


if __name__ == "__main__":
    # Small shapes consistent with the module: in_features=32, hidden=128, out=32.
    B, S = 2, 8
    C_in, H, C_out = 32, 128, 32

    key = jax.random.PRNGKey(0)
    kx, k1, kb1, k2, kb2, k3, kb3 = jax.random.split(key, 7)

    x = jax.random.normal(kx, (B, S, C_in), dtype=jnp.float32)
    bound1 = 1.0 / math.sqrt(C_in)
    w1 = jax.random.uniform(k1, (C_in, H), minval=-bound1, maxval=bound1, dtype=jnp.float32)
    b1 = jax.random.uniform(kb1, (H,), minval=-bound1, maxval=bound1, dtype=jnp.float32)
    bound2 = 1.0 / math.sqrt(H)
    w2 = jax.random.uniform(k2, (H, C_out), minval=-bound2, maxval=bound2, dtype=jnp.float32)
    b2 = jax.random.uniform(kb2, (C_out,), minval=-bound2, maxval=bound2, dtype=jnp.float32)

    x2d = x.reshape(B * S, C_in)

    # f32 path (exact parity with PyTorch nn.GELU / nn.Linear math).
    params = prepare_mlp_weights(w1, b1, w2, b2)
    out = jax.block_until_ready(mlp_pallas(x2d, params))
    ref = mlp_reference(x2d, w1, b1, w2, b2)
    assert out.shape == (B * S, C_out)
    assert jnp.allclose(out, ref, atol=1e-5, rtol=1e-5), "Pallas f32 output mismatch vs reference"

    # Mixed-precision path: bf16 MXU feeds, f32 accumulation (loose tolerance).
    params_bf16 = prepare_mlp_weights(w1.astype(jnp.bfloat16), b1.astype(jnp.bfloat16),
                                      w2.astype(jnp.bfloat16), b2.astype(jnp.bfloat16))
    out_bf16 = jax.block_until_ready(mlp_pallas(x2d.astype(jnp.bfloat16), params_bf16))
    assert out_bf16.shape == (B * S, C_out)
    assert jnp.allclose(out_bf16.astype(jnp.float32), ref, atol=0.25, rtol=0.25), \
        "Pallas bf16 output mismatch vs reference"

    # Multi-step hidden reduction (exercises the j-accumulation path): H2=384, th=128.
    H2 = 384
    w1b = jax.random.uniform(k3, (C_in, H2), minval=-bound1, maxval=bound1, dtype=jnp.float32)
    b1b = jax.random.uniform(kb3, (H2,), minval=-bound1, maxval=bound1, dtype=jnp.float32)
    bound3 = 1.0 / math.sqrt(H2)
    w2b = jax.random.uniform(k2, (H2, C_out), minval=-bound3, maxval=bound3, dtype=jnp.float32)
    b2b = jax.random.uniform(kb2, (C_out,), minval=-bound3, maxval=bound3, dtype=jnp.float32)
    out_multi = jax.block_until_ready(
        mlp_pallas(x2d, prepare_mlp_weights(w1b, b1b, w2b, b2b), th=128))
    ref_multi = mlp_reference(x2d, w1b, b1b, w2b, b2b)
    assert jnp.allclose(out_multi, ref_multi, atol=1e-5, rtol=1e-5), \
        "Pallas multi-step-reduction output mismatch vs reference"

    out_final = out.reshape(B, S, C_out)  # back to (B, S, C_out)
    jax.block_until_ready(out_final)
    print("KERNEL_OK")
</pallas_src>

<mosaic_0001>
module attributes {stable_mosaic.version = 11 : i64} {
  func.func @_mlp_kernel_f32_out(%arg0: i32, %arg1: i32, %arg2: memref<8x128xf32, #tpu.memory_space<vmem>>, %arg3: memref<128x128xf32, #tpu.memory_space<vmem>>, %arg4: memref<1x128xf32, #tpu.memory_space<vmem>>, %arg5: memref<128x128xf32, #tpu.memory_space<vmem>>, %arg6: memref<1x128xf32, #tpu.memory_space<vmem>>, %arg7: memref<8x128xf32, #tpu.memory_space<vmem>>) attributes {dimension_semantics = [#tpu.dimension_semantics<parallel>, #tpu.dimension_semantics<arbitrary>], iteration_bounds = array<i64: 2, 1>, scalar_prefetch = 0 : i64, scratch_operands = 0 : i64, tpu.core_type = #tpu.core_type<tc>, window_params = [{transform_indices = @transform_0, window_bounds = array<i64: 8, 128>}, {transform_indices = @transform_1, window_bounds = array<i64: 128, 128>}, {transform_indices = @transform_2, window_bounds = array<i64: 1, 128>}, {transform_indices = @transform_3, window_bounds = array<i64: 128, 128>}, {pipeline_mode = #tpu.pipeline_mode<synchronous>, transform_indices = @transform_4, window_bounds = array<i64: 1, 128>}, {transform_indices = @transform_5, window_bounds = array<i64: 8, 128>}]} {
    %c0_i32 = arith.constant 0 : i32
    %0 = arith.cmpi eq, %arg1, %c0_i32 : i32
    %1 = arith.extui %0 : i1 to i32
    %c0_i32_0 = arith.constant 0 : i32
    %2 = arith.cmpi ne, %1, %c0_i32_0 : i32
    scf.if %2 {
      %c0_16 = arith.constant 0 : index
      %c0_17 = arith.constant 0 : index
      %22 = vector.load %arg6[%c0_16, %c0_17] : memref<1x128xf32, #tpu.memory_space<vmem>>, vector<1x128xf32>
      %23 = vector.shape_cast %22 : vector<1x128xf32> to vector<1x128xf32>
      %24 = vector.broadcast %23 : vector<1x128xf32> to vector<8x128xf32>
      %c0_18 = arith.constant 0 : index
      %c0_19 = arith.constant 0 : index
      %25 = vector.load %arg7[%c0_18, %c0_19] : memref<8x128xf32, #tpu.memory_space<vmem>>, vector<8x128xf32>
      tpu.vector_store %arg7[%c0_18, %c0_19], %24 {strides = array<i32>} : memref<8x128xf32, #tpu.memory_space<vmem>>, vector<8x128xf32>,
    } else {
    }
    %c0 = arith.constant 0 : index
    %c0_1 = arith.constant 0 : index
    %3 = vector.load %arg2[%c0, %c0_1] : memref<8x128xf32, #tpu.memory_space<vmem>>, vector<8x128xf32>
    %c0_2 = arith.constant 0 : index
    %c0_3 = arith.constant 0 : index
    %4 = vector.load %arg3[%c0_2, %c0_3] : memref<128x128xf32, #tpu.memory_space<vmem>>, vector<128x128xf32>
    %cst = arith.constant dense<0.000000e+00> : vector<8x128xf32>
    %5 = tpu.matmul %3, %4, %cst {dimension_numbers = #tpu.dot_dimension_numbers<[1], [0], [0], [1], [0, 0, 1, 1], [], []>} : vector<8x128xf32>, vector<128x128xf32>, vector<8x128xf32> -> vector<8x128xf32>
    %c0_4 = arith.constant 0 : index
    %c0_5 = arith.constant 0 : index
    %6 = vector.load %arg4[%c0_4, %c0_5] : memref<1x128xf32, #tpu.memory_space<vmem>>, vector<1x128xf32>
    %7 = vector.broadcast %6 : vector<1x128xf32> to vector<8x128xf32>
    %8 = arith.addf %5, %7 : vector<8x128xf32>
    %cst_6 = arith.constant 5.000000e-01 : f32
    %9 = vector.broadcast %cst_6 : f32 to vector<8x128xf32>
    %10 = arith.mulf %9, %8 : vector<8x128xf32>
    %cst_7 = arith.constant 0.707106769 : f32
    %11 = vector.broadcast %cst_7 : f32 to vector<8x128xf32>
    %12 = arith.mulf %8, %11 : vector<8x128xf32>
    %13 = math.erf %12 : vector<8x128xf32>
    %cst_8 = arith.constant 1.000000e+00 : f32
    %14 = vector.broadcast %cst_8 : f32 to vector<8x128xf32>
    %15 = arith.addf %14, %13 : vector<8x128xf32>
    %16 = arith.mulf %10, %15 : vector<8x128xf32>
    %c0_9 = arith.constant 0 : index
    %c0_10 = arith.constant 0 : index
    %17 = vector.load %arg7[%c0_9, %c0_10] : memref<8x128xf32, #tpu.memory_space<vmem>>, vector<8x128xf32>
    %c0_11 = arith.constant 0 : index
    %c0_12 = arith.constant 0 : index
    %18 = vector.load %arg5[%c0_11, %c0_12] : memref<128x128xf32, #tpu.memory_space<vmem>>, vector<128x128xf32>
    %cst_13 = arith.constant dense<0.000000e+00> : vector<8x128xf32>
    %19 = tpu.matmul %16, %18, %cst_13 {dimension_numbers = #tpu.dot_dimension_numbers<[1], [0], [0], [1], [0, 0, 1, 1], [], []>} : vector<8x128xf32>, vector<128x128xf32>, vector<8x128xf32> -> vector<8x128xf32>
    %20 = arith.addf %17, %19 : vector<8x128xf32>
    %c0_14 = arith.constant 0 : index
    %c0_15 = arith.constant 0 : index
    %21 = vector.load %arg7[%c0_14, %c0_15] : memref<8x128xf32, #tpu.memory_space<vmem>>, vector<8x128xf32>
    tpu.vector_store %arg7[%c0_14, %c0_15], %20 {strides = array<i32>} : memref<8x128xf32, #tpu.memory_space<vmem>>, vector<8x128xf32>,
    return
  }
  func.func @transform_0(%arg0: i32, %arg1: i32) -> (i32, i32) {
    %c0_i32 = arith.constant 0 : i32
    %c0_i32_0 = arith.constant 0 : i32
    return %arg0, %c0_i32 : i32, i32
  }
  func.func @transform_1(%arg0: i32, %arg1: i32) -> (i32, i32) {
    %c0_i32 = arith.constant 0 : i32
    %c0_i32_0 = arith.constant 0 : i32
    return %c0_i32, %arg1 : i32, i32
  }
  func.func @transform_2(%arg0: i32, %arg1: i32) -> (i32, i32) {
    %c0_i32 = arith.constant 0 : i32
    %c0_i32_0 = arith.constant 0 : i32
    return %c0_i32, %arg1 : i32, i32
  }
  func.func @transform_3(%arg0: i32, %arg1: i32) -> (i32, i32) {
    %c0_i32 = arith.constant 0 : i32
    %c0_i32_0 = arith.constant 0 : i32
    return %arg1, %c0_i32 : i32, i32
  }
  func.func @transform_4(%arg0: i32, %arg1: i32) -> (i32, i32) {
    %c0_i32 = arith.constant 0 : i32
    %c0_i32_0 = arith.constant 0 : i32
    %c0_i32_1 = arith.constant 0 : i32
    return %c0_i32, %c0_i32_0 : i32, i32
  }
  func.func @transform_5(%arg0: i32, %arg1: i32) -> (i32, i32) {
    %c0_i32 = arith.constant 0 : i32
    %c0_i32_0 = arith.constant 0 : i32
    return %arg0, %c0_i32 : i32, i32
  }
}

</mosaic_0001>

<bundles_post_ra>
// kernel: tpu_custom_call.1
= control target key start
LH: loop header
LB: loop body
LE: loop exit
PB: predicated region body
PF: predicated region fallthrough
CT: control target
= control target key end

     0   :  { %10 = vsyncpa [#allocation3], 0  ;;  %s1056_s0 = inlined_call_operand.hbm [shape: f32[16,128], index: 0, kind: input, shape index: {}]   ;;  %s1057_s1 = inlined_call_operand.hbm [shape: f32[128,128], index: 1, kind: input, shape index: {}]   ;;  %s1058_s2 = inlined_call_operand.vmem [shape: f32[1,128], index: 2, kind: input, shape index: {}]   ;;  %s1059_s3 = inlined_call_operand.hbm [shape: f32[128,128], index: 3, kind: input, shape index: {}]   ;;  %s1060_s4 = inlined_call_operand.vmem [shape: f32[1,128], index: 4, kind: input, shape index: {}]   ;;  %s1061_s5 = inlined_call_operand.hbm [shape: f32[16,128], index: 5, kind: output, shape index: {}]  }
   0x1   :  { %12 = vsyncpa [#allocation3 + $0x1], 0 }
   0x2   :  { %13 = vsyncpa [#allocation6], 0 }
   0x3   :  { %14 = vsyncpa [#allocation4], 0 }
   0x4   :  { %16 = vsyncpa [#allocation4 + $0x1], 0  ;;  %s899_s18 = smov 0   ;;  %s901_s19 = smov 0  }
   0x5   :  { %s903_s20 = smov 0   ;;  %s905_s21 = smov 0  }
   0x6   :  { %s907_s22 = smov 0   ;;  %s909_s23 = smov 0  }
   0x7 LB: > { %s579_s24 = sadd.s32 4294967295, %s863_s23   ;;  %p581_p0 = scmp.ge.s32.totalorder %s863_s23, 1  ;;  %s863_s23 = sphi %s909_s23, %s22_s23   ;;  %s859_s22 = sphi %s907_s22, %s1071_s22   ;;  %s855_s21 = sphi %s905_s21, %s1070_s21   ;;  %s851_s20 = sphi %s903_s20, %s1069_s20   ;;  %s847_s19 = sphi %s901_s19, %s1068_s19   ;;  %s843_s18 = sphi %s899_s18, %s1067_s18  }
   0x8   : > { %p933_p1 = scmp.eq.s32.totalorder %s579_s24, 0  ;;  %p190_p2 = scmp.lt.s32.totalorder %s863_s23, 3 }
   0x9   : > { %s203_s28 = sshll.u32 %s1057_s1, 4  ;;  %s865_s30 = smov [#allocation5]   ;;  %s204_s28 = int_to_ptr.hbm [resolvable:$true] %s203_s28 }
   0xa   : > { %p941_p3 = pnand %p581_p0, %p190_p2  ;;  %s205_s6 = sshll.u32 %s865_s30, 4  ;;  %s206_s6 = int_to_ptr.vmem [resolvable:$true] %s205_s6 }
   0xb   : > { %p585_p6 = scmp.ge.s32.totalorder %s863_s23, 2  ;;  %s226_s9 = sshll.u32 %s1059_s3, 4  ;;  %s227_s9 = int_to_ptr.hbm [resolvable:$true] %s226_s9 }
   0xc   : > { %p610_p4 = pneg %p941_p3  ;;  %s866_s10 = smov 128  }
   0xd   : > { %s867_s11 = smov 8   ;;  %s868_s12 = smov [#allocation7]  }
   0xe   : > { %p611_p5 = pnand %p610_p4, %p933_p1  ;;  %s228_s13 = sshll.u32 %s868_s12, 4  ;;  %s229_s13 = int_to_ptr.vmem [resolvable:$true] %s228_s13 }
   0xf   : > { %s34_s14 = sadd.s32 1, %s859_s22  ;;  %s580_s15 = sadd.s32 4294967294, %s863_s23  }
  0x10   : > { %613 = dma.hbm_to_vmem [thread:$0]  (!%p611_p5), %s204_s28, 2048, %s206_s6, [#allocation6], %s866_s10, %s866_s10, %s867_s11  }
  0x11   : > { %616 = dma.hbm_to_vmem [thread:$0]  (!%p611_p5), %s227_s9, 2048, %s229_s13, [#allocation6], %s866_s10, %s866_s10, %s867_s11  }
  0x12   : > { %p36_p7 = scmp.ge.s32.totalorder %s34_s14, 2  ;;  %s41_s16 = sadd.s32 1, %s851_s20 }
  0x13   : > { %p48_p8 = scmp.ne.s32.totalorder %s851_s20, %s847_s19  ;;  %p49_p9 = scmp.eq.s32.totalorder %s863_s23, 0 }
  0x14   : > { %s1073_s14 = smov (%p36_p7, %s34_s14), 0  ;;  %p54_p10 = scmp.ne.s32.totalorder %s847_s19, %s843_s18 }
  0x15   : > { %s38_s17 = ssub.s32 %s859_s22, %s1073_s14  ;;  %p177_p11 = scmp.eq.s32.totalorder %s579_s24, 1 }
  0x16   : > { %p39_p12 = scmp.eq.s32.totalorder %s38_s17, 0  ;;  %p969_p13 = por %p933_p1, %p54_p10 }
  0x17   : > { %p973_p0 = por %p177_p11, %p48_p8  ;;  %p183_p2 = scmp.eq.s32.totalorder %s580_s15, 1 }
  0x18   : > { %s978_s28 = scalar_select %p39_p12, %s851_s20, %s41_s16  }
  0x19   : > { %p50_p4 = por %p49_p9, %p48_p8  ;;  %p980_p5 = por %p183_p2, %p54_p10 }
  0x1a   : > { %s245_s6 = sand.u32 1, %s851_s20   ;;  %s587_s24 = sshll.u32 %s859_s22, 3 }
  0x1b   : > { %p627_p7 = scmp.lt.s32.totalorder %s863_s23, 2  ;;  %s586_s7 = sshll.u32 %s245_s6, 3 }
  0x1c   : > { %s253_s10 = scalar_lea.hbm %s1056_s0, %s587_s24  ;;  %s249_s12 = scalar_lea.vmem [#allocation2], %s586_s7 }
  0x1d   : > { %s255_s11 = sshll.u32 %s253_s10, 4  ;;  %s257_s13 = sshll.u32 %s249_s12, 4  ;;  %s256_s11 = int_to_ptr.hbm [resolvable:$true] %s255_s11  ;;  %s258_s13 = int_to_ptr.vmem [resolvable:$true] %s257_s13 }
  0x1e   : > { %p618_p11 = pnand %p627_p7, %p50_p4  ;;  %s246_s15 = scalar_lea.sflag [#allocation3], %s245_s6 }
  0x1f   : > { %266 = sbr.rel (%p941_p3) target bundleno = 381 (0x17d), region = 40  ;;  %s993_s16 = sand.u32 (!%p941_p3), 1, %s847_s19  }
  0x20   : > { %620 = dma.hbm_to_vmem [thread:$0]  (!%p618_p11), %s256_s11, 128, %s258_s13, %s246_s15  }
  0x21   : > { %s589_s17 = sshll.u32 (!%p941_p3), %s993_s16, 3  ;;  %s269_s24 = scalar_lea.sflag (!%p941_p3), [#allocation3], %s993_s16 }
  0x22   : > { %s999_s7 = scalar_lea.vmem (!%p941_p3), [#allocation2], %s589_s17 }
  0x24   : > { %830 = dma.done.wait (%p969_p13), %s269_s24, 128  }
  0x25   : > { %832 = vsyncadd (%p969_p13), %s269_s24, 4294967168 }
  0x26   : > { %834 = dma.done.wait (%p933_p1), [#allocation6], 4096  }
  0x27   : > { %836 = vsyncadd (%p933_p1), [#allocation6], 4294963200  ;;  %v342_v0 = vld [vmem:[#allocation5 + $0x78] sm:$0xff]  ;;  %v341_v1 = vld [vmem:[#allocation5 + $0x70] sm:$0xff]  ;;  %s595_s26 = sshll.u32 %s855_s21, 3  ;;  %s312_s12 = scalar_lea.vmem [#allocation8], %s589_s17 }
  0x28   : > { %347 = vmatpush.msra.mxu0 %v342_v0  ;;  %v340_v2 = vld [vmem:[#allocation5 + $0x68] sm:$0xff]  ;;  %v339_v3 = vld [vmem:[#allocation5 + $0x60] sm:$0xff]  ;;  %v338_v4 = vld [vmem:[#allocation5 + $0x58] sm:$0xff]  ;;  %s461_s9 = scalar_lea.hbm %s1061_s5, %s595_s26  ;;  %s463_s13 = sshll.u32 %s312_s12, 4  ;;  %s464_s13 = int_to_ptr.vmem [resolvable:$true] %s463_s13 }
  0x29   : > { %v337_v5 = vld [vmem:[#allocation5 + $0x50] sm:$0xff]  ;;  %v336_v6 = vld [vmem:[#allocation5 + $0x48] sm:$0xff]  ;;  %v335_v7 = vld [vmem:[#allocation5 + $0x40] sm:$0xff]  ;;  %s465_s15 = sshll.u32 %s461_s9, 4  ;;  %s451_s24 = scalar_lea.sflag [#allocation4], %s993_s16  ;;  %s466_s15 = int_to_ptr.hbm [resolvable:$true] %s465_s15 }
  0x2a   : > { %348 = vmatpush.msra.mxu0 %v341_v1  ;;  %v334_v8 = vld [vmem:[#allocation5 + $0x38] sm:$0xff]  ;;  %v333_v9 = vld [vmem:[#allocation5 + $0x30] sm:$0xff]  ;;  %v332_v10 = vld [vmem:[#allocation5 + $0x28] sm:$0xff]  ;;  %s791_s21 = sshra.s32 %s466_s15, 4  ;;  %s797_s26 = scalar_lea.hbm %s1061_s5, 16  ;;  %s792_s21 = int_to_ptr.hbm [resolvable:$true] %s791_s21 }
  0x2b   : > { %v331_v11 = vld [vmem:[#allocation5 + $0x20] sm:$0xff]  ;;  %v330_v12 = vld [vmem:[#allocation5 + $0x18] sm:$0xff]  ;;  %v329_v13 = vld [vmem:[#allocation5 + $0x10] sm:$0xff]  ;;  %p798_p9 = scmp.lt.s32.totalorder %s792_s21, %s1061_s5 }
  0x2c   : > { %349 = vmatpush.msra.mxu0 %v340_v2  ;;  %v328_v14 = vld [vmem:[#allocation5 + $0x8] sm:$0xff]  ;;  %v327_v15 = vld [vmem:[#allocation5] sm:$0xff]  ;;  %v326_v16 = vld [vmem:[%s999_s7] sm:$0xff]  ;;  %s793_s7 = scalar_lea.hbm %s792_s21, 8 }
  0x2d   : > { %v427_v17 = vld [vmem:[#allocation7 + $0x78] sm:$0xff]  ;;  %v426_v18 = vld [vmem:[#allocation7 + $0x70] sm:$0xff]  ;;  %v425_v19 = vld [vmem:[#allocation7 + $0x68] sm:$0xff]  ;;  %p794_p1 = scmp.ne.s32.totalorder %s792_s21, %s793_s7  ;;  %p799_p10 = scmp.lt.s32.totalorder %s797_s26, %s793_s7 }
  0x2e   : > { %350 = vmatpush.msra.mxu0 %v339_v3  ;;  %428 = vmatpush.msra.mxu1 %v427_v17  ;;  %v424_v20 = vld [vmem:[#allocation7 + $0x60] sm:$0xff]  ;;  %v683_v21 = vld [vmem:[%s1058_s2] ss:$0 sm:$0xff]  ;;  %v423_v22 = vld [vmem:[#allocation7 + $0x58] sm:$0xff] }
  0x2f   : > { %v422_v23 = vld [vmem:[#allocation7 + $0x50] sm:$0xff]  ;;  %v421_v25 = vld [vmem:[#allocation7 + $0x48] sm:$0xff]  ;;  %v420_v27 = vld [vmem:[#allocation7 + $0x40] sm:$0xff]  ;;  %p795_p3 = pnand %p794_p1, %p973_p0  ;;  %p800_p12 = por %p799_p10, %p798_p9 }
  0x30   : > { %351 = vmatpush.msra.mxu0 %v338_v4  ;;  %429 = vmatpush.msra.mxu1 %v426_v18  ;;  %v419_v29 = vld [vmem:[#allocation7 + $0x38] sm:$0xff]  ;;  %v418_v31 = vld [vmem:[#allocation7 + $0x30] sm:$0xff]  ;;  %v417_v33 = vld [vmem:[#allocation7 + $0x28] sm:$0xff] }
  0x31   : > { %v416_v36 = vld [vmem:[#allocation7 + $0x20] sm:$0xff]  ;;  %v415_v39 = vld [vmem:[#allocation7 + $0x18] sm:$0xff]  ;;  %v414_v42 = vld [vmem:[#allocation7 + $0x10] sm:$0xff]  ;;  %p796_p8 = pneg %p795_p3 }
  0x32   : > { %352 = vmatpush.msra.mxu0 %v337_v5  ;;  %430 = vmatpush.msra.mxu1 %v425_v19  ;;  %v413_v45 = vld [vmem:[#allocation7 + $0x8] sm:$0xff]  ;;  %v412_v47 = vld [vmem:[#allocation7] sm:$0xff] }
  0x33   : > { %p801_p13 = pnand %p800_p12, %p796_p8 }
  0x34   : > { %353 = vmatpush.msra.mxu0 %v336_v6  ;;  %431 = vmatpush.msra.mxu1 %v424_v20 }
  0x36   : > { %354 = vmatpush.msra.mxu0 %v335_v7  ;;  %432 = vmatpush.msra.mxu1 %v423_v22 }
  0x38   : > { %355 = vmatpush.msra.mxu0 %v334_v8  ;;  %433 = vmatpush.msra.mxu1 %v422_v23 }
  0x3a   : > { %356 = vmatpush.msra.mxu0 %v333_v9  ;;  %434 = vmatpush.msra.mxu1 %v421_v25 }
  0x3c   : > { %357 = vmatpush.msra.mxu0 %v332_v10  ;;  %435 = vmatpush.msra.mxu1 %v420_v27 }
  0x3e   : > { %358 = vmatpush.msra.mxu0 %v331_v11  ;;  %436 = vmatpush.msra.mxu1 %v419_v29  ;;  %v684_v11 = vld [vmem:[%s1060_s4] ss:$0 sm:$0xff] }
  0x40   : > { %359 = vmatpush.msra.mxu0 %v330_v12  ;;  %437 = vmatpush.msra.mxu1 %v418_v31 }
  0x42   : > { %360 = vmatpush.msra.mxu0 %v329_v13  ;;  %438 = vmatpush.msra.mxu1 %v417_v33 }
  0x44   : > { %361 = vmatpush.msra.mxu0 %v328_v14  ;;  %439 = vmatpush.msra.mxu1 %v416_v36 }
  0x46   : > { %362 = vmatpush.msra.mxu0 %v327_v15  ;;  %440 = vmatpush.msra.mxu1 %v415_v39 }
  0x47   : > { %363 = vmatmul.f32.vlgmr.msra.gmra.mxu0 %v326_v16 }
  0x48   : > { %441 = vmatpush.msra.mxu1 %v414_v42 }
  0x4a   : > { %442 = vmatpush.msra.mxu1 %v413_v45 }
  0x4c   : > { %443 = vmatpush.msra.mxu1 %v412_v47 }
  0xc4   : > { %v364_v24 = vpop.f32.mrf.mxu0 }
  0xc5   : > { %v365_v26 = vadd.f32 %v683_v21, %v364_v24 }
  0xc7   : > { %v368_v28 = vmul.f32 0.70710677, %v365_v26  ;;  %v367_v8 = vmul.f32 0.5, %v365_v26 }
  0xc9   : > { %v369_v30 = vmul.f32 %v368_v28, %v368_v28 }
  0xcb   : > { %v370_v32 = vmin.f32 %v369_v30, 16.0 }
  0xcd   : > { %v371_v34 = vmul.f32 2.1237322e-06, %v370_v32  ;;  %v382_v35 = vmul.f32 3.8918573e-05, %v370_v32 }
  0xcf   : > { %v372_v37 = vadd.f32 0.00028619796, %v371_v34  ;;  %v383_v38 = vadd.f32 0.001143296, %v382_v35 }
  0xd1   : > { %v373_v40 = vmul.f32 %v372_v37, %v370_v32  ;;  %v384_v41 = vmul.f32 %v383_v38, %v370_v32 }
  0xd3   : > { %v385_v43 = vadd.f32 0.014752088, %v384_v41  ;;  %v374_v44 = vadd.f32 0.0036580483, %v373_v40 }
  0xd5   : > { %v386_v46 = vmul.f32 %v385_v43, %v370_v32  ;;  %v375_v49 = vmul.f32 %v374_v44, %v370_v32 }
  0xd7   : > { %v387_v48 = vadd.f32 0.112945676, %v386_v46  ;;  %v376_v52 = vadd.f32 0.05243302, %v375_v49 }
  0xd9   : > { %v388_v50 = vmul.f32 %v387_v48, %v370_v32  ;;  %v377_v55 = vmul.f32 %v376_v52, %v370_v32 }
  0xdb   : > { %v389_v51 = vadd.f32 0.4994258, %v388_v50  ;;  %v378_v56 = vadd.f32 0.18741608, %v377_v55 }
  0xdd   : > { %v390_v53 = vmul.f32 %v389_v51, %v370_v32  ;;  %v379_v58 = vmul.f32 %v378_v56, %v370_v32 }
  0xdf   : > { %v391_v54 = vadd.f32 1.0, %v390_v53  ;;  %v380_v62 = vadd.f32 1.1283791, %v379_v58 }
  0xe1   : > { %685 = vrcp.f32 %v391_v54  ;;  %v403_v61 = vand.u32 2147483648, %v391_v54  ;;  %v401_v0 = vand.u32 2147483647, %v391_v54  ;;  %vm397_vm1 = vweird.f32 %v391_v54 }
  0xe2   : > { %v381_v3 = vmul.f32 %v380_v62, %v368_v28 }
  0xe3   : > { %v404_v2 = vor.u32 1.1754944e-38, %v403_v61  ;;  %vm402_vm3 = vcmp.eq.f32.partialorder %v401_v0, 8.507059e+37 }
  0xe7   : > { %v686_v57 = vpop.eup %685 }
  0xe8   : > { %v393_v59 = vmul.f32 %v686_v57, %v391_v54  ;;  %vm398_vm0 = vweird.f32 %v686_v57 }
  0xe9   : > { %vm399_vm2 = vmor %vm397_vm1, %vm398_vm0 }
  0xea   : > { %v394_v60 = vsub.f32 1.0, %v393_v59 }
  0xec   : > { %v395_v63 = vmul.f32 %v686_v57, %v394_v60 }
  0xee   : > { %v396_v1 = vadd.f32 %v686_v57, %v395_v63 }
  0xf0   : > { %v400_v4 = vsel %vm399_vm2, %v686_v57, %v396_v1 }
  0xf1   : > { %v405_v5 = vsel %vm402_vm3, %v404_v2, %v400_v4 }
  0xf2   : > { %v406_v6 = vmul.f32 %v405_v5, %v381_v3 }
  0xf4   : > { %v593_v7 = vclamps-f32 %v406_v6, 1.0 }
  0xf6   : > { %v409_v9 = vadd.f32 1.0, %v593_v7 }
  0xf8   : > { %v410_v10 = vmul.f32 %v409_v9, %v367_v8 }
  0xfa   : > { %444 = vmatmul.f32.vlgmr.msra.gmra.mxu1 %v410_v10 }
 0x177   : > { %v445_v12 = vpop.f32.mrf.mxu1 }
 0x178   : > { %v448_v13 = vadd.f32 %v684_v11, %v445_v12 }
 0x17a   : > { %449 = vst [vmem:[%s312_s12] sm:$0xff] %v448_v13 }
 0x17b   : > { %804 = shalt.err (!%p801_p13)
}
 0x17c   : > { %608 = dma.vmem_to_hbm [thread:$0]  (%p973_p0), %s464_s13, 128, %s466_s15, %s451_s24  }
 0x17d PF: > { %s477_s16 = sand.u32 1, %s843_s18   ;;  %p622_p2 = pnand %p585_p6, %p980_p5 }
 0x17e   : > { %s478_s8 = scalar_lea.sflag [#allocation4], %s477_s16 }
 0x17f   : > { %p623_p4 = pneg %p622_p2 }
 0x181   : > { %838 = dma.done.wait (%p623_p4), %s478_s8, 128  }
 0x182   : > { %840 = vsyncadd (%p623_p4), %s478_s8, 4294967168  ;;  %s22_s23 = sadd.s32 1, %s863_s23   ;;  %s1067_s18 = smov %s847_s19 }
 0x183   : > { %p19_p7 = scmp.ge.s32.totalorder %s22_s23, 4   ;;  %s1068_s19 = smov %s851_s20 }
 0x184   : > { %s1069_s20 = smov %s978_s28  ;;  %s1070_s21 = smov %s859_s22 }
 0x185   : > { %s1071_s22 = smov %s1073_s14  ;;  %21 = sbr.rel (!%p19_p7) target bundleno = 7 (0x7), region = 102 }
 0x18a   :  { %484 = vsyncpa [#allocation3], 1 }
 0x18b   :  { %486 = vsyncpa [#allocation3 + $0x1], 1 }
 0x18c   :  { %487 = vsyncpa [#allocation6], 1 }
 0x18d   :  { %488 = vsyncpa [#allocation4], 1 }
 0x18e   :  { %490 = vsyncpa [#allocation4 + $0x1], 1 }

</bundles_post_ra>
